<compile_context>
chip_gen: v7x
topology: tpu7x:2x2x1
jax: 0.10.0
libtpu: 0.0.40
codegen_flags: <defaults>
</compile_context>

<pallas_src>
import functools
import math

import jax
import jax.numpy as jnp
from jax.experimental import pallas as pl
from jax.experimental.pallas import tpu as pltpu

EPS = 1e-6
NEG_INF = -1e9
MATMUL_DTYPE = jnp.bfloat16            # MXU operand dtype; accumulation is f32


# ------------------------------ small helpers -------------------------------

@functools.lru_cache(maxsize=None)
def _vmem_limit():
    """Scoped-VMEM budget per generation: ~3/4 of physical, capped at 96 MiB.
    128-MiB parts (v5e/v6e) -> 96 MiB; 64-MiB v7x (or unknown) -> 48 MiB."""
    cap = 64 * 1024 * 1024
    try:
        cap = int(pltpu.get_tpu_info().vmem_capacity_bytes)
    except Exception:
        pass
    return min(96 * 1024 * 1024, (cap * 3) // 4)


def _mosaic(sems):
    return pltpu.CompilerParams(dimension_semantics=sems,
                                vmem_limit_bytes=_vmem_limit())


def _row_tile(m, target=512):
    """Row tile for the token axis: full array if small, else 512 with a cdiv grid
    (partial tail block is read-padded / write-masked by Pallas — no tm=M cliff)."""
    return m if m <= target else target


def _q_tile(t, target=128):
    return t if t <= target else target


def _ff_tile(dff, target=2048):
    """d_ff contraction tile: a multiple of 128 that divides d_ff, else full."""
    if dff <= target:
        return dff
    for t in range(target, 127, -128):
        if dff % t == 0:
            return t
    return dff


def _ln(x, a, b, eps):
    """Reference LayerNorm: unbiased std (ddof=1), divide by (std + eps).  f32."""
    mean = jnp.mean(x, axis=-1, keepdims=True)
    xc = x - mean
    var = jnp.sum(xc * xc, axis=-1, keepdims=True) / (x.shape[-1] - 1)
    return a * xc / (jnp.sqrt(var) + eps) + b


# ------------------------------ Pallas kernels ------------------------------

def _ln_qkv_kernel(x_ref, a_ref, b_ref, w_ref, bias_ref, q_ref, k_ref, v_ref,
                   *, eps, D):
    # q|k|v = LayerNorm(x) @ Wqkv + bqkv  (one fused matmul, three lane-dense outputs)
    xn = _ln(x_ref[...], a_ref[...], b_ref[...], eps)
    acc = jnp.dot(xn.astype(w_ref.dtype), w_ref[...],
                  preferred_element_type=jnp.float32) + bias_ref[...]
    q_ref[...] = acc[:, :D].astype(q_ref.dtype)
    k_ref[...] = acc[:, D:2 * D].astype(k_ref.dtype)
    v_ref[...] = acc[:, 2 * D:].astype(v_ref.dtype)


def _kv_kernel(x_ref, w_ref, bias_ref, k_ref, v_ref, *, D):
    # memory K|V = memory @ Wkv + bkv  (memory pre-cast to bf16 once in the wrapper)
    acc = jnp.dot(x_ref[...].astype(w_ref.dtype), w_ref[...],
                  preferred_element_type=jnp.float32) + bias_ref[...]
    k_ref[...] = acc[:, :D].astype(k_ref.dtype)
    v_ref[...] = acc[:, D:].astype(v_ref.dtype)


def _attn_kernel(q_ref, k_ref, v_ref, bias_ref, o_ref, *, H, dk):
    # q: [tq, D] (1/sqrt(dk) folded into Wq), k/v: [Tk, D],
    # bias: [tq, Tk] or [1, Tk] additive mask bias (0 keep / -1e9 drop), bf16.
    tq = q_ref.shape[0]
    Tk = k_ref.shape[0]
    D = H * dk
    q3 = q_ref[...].reshape(tq, H, dk)
    k3 = k_ref[...].reshape(Tk, H, dk)
    v3 = v_ref[...].reshape(Tk, H, dk)
    # All heads in one batched dot_general -> back-to-back MXU pushes,
    # no per-head sub-128 lane slices and no per-head concat.
    s = jnp.einsum("qhd,khd->hqk", q3, k3,
                   preferred_element_type=jnp.float32)          # [H, tq, Tk]
    s = s + bias_ref[...].astype(jnp.float32)                   # broadcast over H (and tq)
    s = s - jnp.max(s, axis=-1, keepdims=True)
    p = jnp.exp(s)
    inv = pl.reciprocal(jnp.sum(p, axis=-1, keepdims=True), approx=True)
    ctx = jnp.einsum("hqk,khd->qhd", (p * inv).astype(v3.dtype), v3,
                     preferred_element_type=jnp.float32)        # [tq, H, dk]
    # TODO(synk): for very long Tk, loop Tk blocks with an online-softmax accumulator
    # instead of materializing the full [H, tq, Tk] score tile.
    o_ref[...] = ctx.reshape(tq, D).astype(o_ref.dtype)         # lane-dense [tq, D] store


def _outproj_res_lnq_kernel(ctx_ref, wo_ref, bo_ref, res_ref, a_ref, b_ref,
                            wq_ref, bq_ref, x_ref, q_ref, *, eps):
    # Fused: self-attn out-proj + residual, then next sublayer's pre-norm + Q proj.
    # Emits both x_new (residual stream, f32) and q = LN(x_new) @ Wq + bq (bf16).
    x_new = res_ref[...] + jnp.dot(ctx_ref[...].astype(wo_ref.dtype), wo_ref[...],
                                   preferred_element_type=jnp.float32) + bo_ref[...]
    x_ref[...] = x_new
    xn = _ln(x_new, a_ref[...], b_ref[...], eps)
    q_ref[...] = (jnp.dot(xn.astype(wq_ref.dtype), wq_ref[...],
                          preferred_element_type=jnp.float32)
                  + bq_ref[...]).astype(q_ref.dtype)


def _ffn_core(ctx_ref, wo_ref, bo_ref, res_ref, a_ref, b_ref,
              w1_ref, b1_ref, w2_ref, b2_ref, fa_ref, fb_ref,
              o_ref, x_sc, xn_sc, acc_sc, *, eps):
    # Fused: cross-attn out-proj + residual + pre-norm + FFN + residual
    # (+ optional final LayerNorm).  Grid axis 1 K-tiles d_ff ("arbitrary") with a
    # VMEM f32 accumulator — keeps weight working set inside v7x's 64 MiB VMEM.
    k = pl.program_id(1)

    @pl.when(k == 0)
    def _():
        x_new = res_ref[...] + jnp.dot(ctx_ref[...].astype(wo_ref.dtype), wo_ref[...],
                                       preferred_element_type=jnp.float32) + bo_ref[...]
        x_sc[...] = x_new
        xn_sc[...] = _ln(x_new, a_ref[...], b_ref[...], eps).astype(xn_sc.dtype)
        acc_sc[...] = jnp.zeros_like(acc_sc)

    h = jnp.dot(xn_sc[...], w1_ref[...], preferred_element_type=jnp.float32) + b1_ref[...]
    h = jnp.maximum(h, 0.0)
    acc_sc[...] += jnp.dot(h.astype(w2_ref.dtype), w2_ref[...],
                           preferred_element_type=jnp.float32)

    @pl.when(k == pl.num_programs(1) - 1)
    def _():
        y = x_sc[...] + acc_sc[...] + b2_ref[...]
        if fa_ref is not None:                       # final LayerNorm folded in (last layer)
            y = _ln(y, fa_ref[...], fb_ref[...], eps)
        o_ref[...] = y


def _outproj_res_ffn_kernel(ctx, wo, bo, res, a, b, w1, b1, w2, b2,
                            o, x_sc, xn_sc, acc_sc, *, eps):
    _ffn_core(ctx, wo, bo, res, a, b, w1, b1, w2, b2, None, None,
              o, x_sc, xn_sc, acc_sc, eps=eps)


def _outproj_res_ffn_final_kernel(ctx, wo, bo, res, a, b, w1, b1, w2, b2, fa, fb,
                                  o, x_sc, xn_sc, acc_sc, *, eps):
    _ffn_core(ctx, wo, bo, res, a, b, w1, b1, w2, b2, fa, fb,
              o, x_sc, xn_sc, acc_sc, eps=eps)


def _layernorm_kernel(x_ref, a_ref, b_ref, o_ref, *, eps):
    o_ref[...] = _ln(x_ref[...], a_ref[...], b_ref[...], eps)


# ------------------------------ kernel wrappers ------------------------------
# TODO(synk): once stable across jax versions, add pipeline_mode=pl.Buffered(1) on the
# constant-index weight blocks and Buffered(3) on the streamed activation blocks.

def ln_qkv(x2d, a, b, w, bias, D):
    M = x2d.shape[0]
    tm = _row_tile(M)
    return pl.pallas_call(
        functools.partial(_ln_qkv_kernel, eps=EPS, D=D),
        out_shape=tuple(jax.ShapeDtypeStruct((M, D), MATMUL_DTYPE) for _ in range(3)),
        grid=(pl.cdiv(M, tm),),
        in_specs=[pl.BlockSpec((tm, D), lambda i: (i, 0)),
                  pl.BlockSpec((1, D), lambda i: (0, 0)),
                  pl.BlockSpec((1, D), lambda i: (0, 0)),
                  pl.BlockSpec((D, 3 * D), lambda i: (0, 0)),   # weight resident across M
                  pl.BlockSpec((1, 3 * D), lambda i: (0, 0))],
        out_specs=[pl.BlockSpec((tm, D), lambda i: (i, 0)) for _ in range(3)],
        compiler_params=_mosaic(("parallel",)),
    )(x2d, a, b, w, bias)


def kv_proj(mem2d, w, bias, D):
    M = mem2d.shape[0]
    tm = _row_tile(M)
    return pl.pallas_call(
        functools.partial(_kv_kernel, D=D),
        out_shape=tuple(jax.ShapeDtypeStruct((M, D), MATMUL_DTYPE) for _ in range(2)),
        grid=(pl.cdiv(M, tm),),
        in_specs=[pl.BlockSpec((tm, D), lambda i: (i, 0)),
                  pl.BlockSpec((D, 2 * D), lambda i: (0, 0)),
                  pl.BlockSpec((1, 2 * D), lambda i: (0, 0))],
        out_specs=[pl.BlockSpec((tm, D), lambda i: (i, 0)) for _ in range(2)],
        compiler_params=_mosaic(("parallel",)),
    )(mem2d, w, bias)


def attention(q, k, v, bias, H):
    B, Tq, D = q.shape
    Tk = k.shape[1]
    tq = _q_tile(Tq)
    if bias.shape[1] == 1:
        bias_spec = pl.BlockSpec((None, 1, Tk), lambda b, i: (b, 0, 0))     # bcast in-kernel
    else:
        bias_spec = pl.BlockSpec((None, tq, Tk), lambda b, i: (b, i, 0))
    return pl.pallas_call(
        functools.partial(_attn_kernel, H=H, dk=D // H),
        out_shape=jax.ShapeDtypeStruct((B, Tq, D), MATMUL_DTYPE),
        grid=(B, pl.cdiv(Tq, tq)),
        in_specs=[pl.BlockSpec((None, tq, D), lambda b, i: (b, i, 0)),
                  pl.BlockSpec((None, Tk, D), lambda b, i: (b, 0, 0)),
                  pl.BlockSpec((None, Tk, D), lambda b, i: (b, 0, 0)),
                  bias_spec],
        out_specs=pl.BlockSpec((None, tq, D), lambda b, i: (b, i, 0)),
        compiler_params=_mosaic(("parallel", "parallel")),
    )(q, k, v, bias)


def outproj_res_lnq(ctx2d, wo, bo, res2d, a, b, wq, bq):
    M, D = ctx2d.shape
    tm = _row_tile(M)
    return pl.pallas_call(
        functools.partial(_outproj_res_lnq_kernel, eps=EPS),
        out_shape=(jax.ShapeDtypeStruct((M, D), jnp.float32),
                   jax.ShapeDtypeStruct((M, D), MATMUL_DTYPE)),
        grid=(pl.cdiv(M, tm),),
        in_specs=[pl.BlockSpec((tm, D), lambda i: (i, 0)),
                  pl.BlockSpec((D, D), lambda i: (0, 0)),
                  pl.BlockSpec((1, D), lambda i: (0, 0)),
                  pl.BlockSpec((tm, D), lambda i: (i, 0)),
                  pl.BlockSpec((1, D), lambda i: (0, 0)),
                  pl.BlockSpec((1, D), lambda i: (0, 0)),
                  pl.BlockSpec((D, D), lambda i: (0, 0)),
                  pl.BlockSpec((1, D), lambda i: (0, 0))],
        out_specs=[pl.BlockSpec((tm, D), lambda i: (i, 0)),
                   pl.BlockSpec((tm, D), lambda i: (i, 0))],
        compiler_params=_mosaic(("parallel",)),
    )(ctx2d, wo, bo, res2d, a, b, wq, bq)


def outproj_res_ffn(ctx2d, wo, bo, res2d, a, b, w1, b1, w2, b2, final_norm=None):
    M, D = ctx2d.shape
    Dff = w1.shape[1]
    tm = _row_tile(M)
    tk = _ff_tile(Dff)
    in_specs = [pl.BlockSpec((tm, D), lambda i, j: (i, 0)),     # ctx (bf16)
                pl.BlockSpec((D, D), lambda i, j: (0, 0)),      # Wo
                pl.BlockSpec((1, D), lambda i, j: (0, 0)),      # bo
                pl.BlockSpec((tm, D), lambda i, j: (i, 0)),     # residual (f32)
                pl.BlockSpec((1, D), lambda i, j: (0, 0)),      # ln a
                pl.BlockSpec((1, D), lambda i, j: (0, 0)),      # ln b
                pl.BlockSpec((D, tk), lambda i, j: (0, j)),     # W1 tile (K-tiled)
                pl.BlockSpec((1, tk), lambda i, j: (0, j)),     # b1 tile
                pl.BlockSpec((tk, D), lambda i, j: (j, 0)),     # W2 tile (K-tiled)
                pl.BlockSpec((1, D), lambda i, j: (0, 0))]      # b2
    args = [ctx2d, wo, bo, res2d, a, b, w1, b1, w2, b2]
    if final_norm is not None:
        kernel = functools.partial(_outproj_res_ffn_final_kernel, eps=EPS)
        in_specs += [pl.BlockSpec((1, D), lambda i, j: (0, 0)),
                     pl.BlockSpec((1, D), lambda i, j: (0, 0))]
        args += [final_norm[0], final_norm[1]]
    else:
        kernel = functools.partial(_outproj_res_ffn_kernel, eps=EPS)
    return pl.pallas_call(
        kernel,
        out_shape=jax.ShapeDtypeStruct((M, D), jnp.float32),
        grid=(pl.cdiv(M, tm), Dff // tk),
        in_specs=in_specs,
        out_specs=pl.BlockSpec((tm, D), lambda i, j: (i, 0)),   # resident across K axis
        scratch_shapes=[pltpu.VMEM((tm, D), jnp.float32),       # x_new
                        pltpu.VMEM((tm, D), MATMUL_DTYPE),      # LN(x_new), bf16
                        pltpu.VMEM((tm, D), jnp.float32)],      # FFN accumulator
        compiler_params=_mosaic(("parallel", "arbitrary")),
    )(*args)


def layernorm(x2d, a, b):
    M, D = x2d.shape
    tm = _row_tile(M)
    return pl.pallas_call(
        functools.partial(_layernorm_kernel, eps=EPS),
        out_shape=jax.ShapeDtypeStruct((M, D), jnp.float32),
        grid=(pl.cdiv(M, tm),),
        in_specs=[pl.BlockSpec((tm, D), lambda i: (i, 0)),
                  pl.BlockSpec((1, D), lambda i: (0, 0)),
                  pl.BlockSpec((1, D), lambda i: (0, 0))],
        out_specs=pl.BlockSpec((tm, D), lambda i: (i, 0)),
        compiler_params=_mosaic(("parallel",)),
    )(x2d, a, b)


# -------------------------------- model glue --------------------------------

def decoder_layer_forward(p, x2d, mem2d, shapes, src_bias, tgt_bias, H, final_norm):
    B, T, S, D = shapes
    # sublayer 0: pre-norm + fused QKV projection, self-attention
    q, k, v = ln_qkv(x2d, p["ln0_a"], p["ln0_b"], p["w_qkv"], p["b_qkv"], D)
    ctx = attention(q.reshape(B, T, D), k.reshape(B, T, D), v.reshape(B, T, D),
                    tgt_bias, H)
    # out-proj + residual FUSED with sublayer 1's pre-norm + Q projection
    x2d, qc = outproj_res_lnq(ctx.reshape(B * T, D), p["wo_self"], p["bo_self"],
                              x2d, p["ln1_a"], p["ln1_b"], p["w_q"], p["b_q"])
    # sublayer 1: fused memory K/V projection, cross-attention
    km, vm = kv_proj(mem2d, p["w_kv"], p["b_kv"], D)
    ctx = attention(qc.reshape(B, T, D), km.reshape(B, S, D), vm.reshape(B, S, D),
                    src_bias, H)
    # out-proj + residual FUSED with sublayer 2 (pre-norm + FFN + residual)
    # and, on the last executed layer, with the decoder's final LayerNorm.
    x2d = outproj_res_ffn(ctx.reshape(B * T, D), p["wo_src"], p["bo_src"], x2d,
                          p["ln2_a"], p["ln2_b"], p["w1"], p["b1"], p["w2"], p["b2"],
                          final_norm=final_norm)
    return x2d


def decoder_forward(params, x, memory, src_mask, tgt_mask, H, W):
    B, T, D = x.shape
    S = memory.shape[1]
    # Masks -> additive bias ONCE (0 keep / -1e9 drop), bf16; no [B,H,Tq,Tk] (nor
    # [B,Tq,Tk] for a [B,1,Tk] mask) broadcast ever materialized in HBM.
    tgt_bias = ((1.0 - tgt_mask.astype(jnp.float32).reshape(B, -1, T))
                * NEG_INF).astype(MATMUL_DTYPE)
    src_bias = ((1.0 - src_mask.astype(jnp.float32).reshape(B, -1, S))
                * NEG_INF).astype(MATMUL_DTYPE)
    x2d = x.reshape(B * T, D).astype(jnp.float32)
    mem2d = memory.reshape(B * S, D).astype(MATMUL_DTYPE)     # cast once, reused each layer
    # `W` is only zipped against the layers in the reference — it bounds the loop.
    active = list(zip(W, params["layers"]))
    n_active = len(active)
    for idx, (_, lp) in enumerate(active):
        final = ((params["norm_a"], params["norm_b"])
                 if idx == n_active - 1 else None)
        x2d = decoder_layer_forward(lp, x2d, mem2d, (B, T, S, D),
                                    src_bias, tgt_bias, H, final)
    if n_active == 0:                                          # edge case: no layers run
        x2d = layernorm(x2d, params["norm_a"], params["norm_b"])
    return x2d.reshape(B, T, D)


# ------------------------------- param init ---------------------------------

def _init_linear(key, din, dout, scale=0.1):
    kw, kb = jax.random.split(key)
    return (scale * jax.random.normal(kw, (dout, din), jnp.float32),
            scale * jax.random.normal(kb, (dout,), jnp.float32))


def _init_mha(key, D):
    ks = jax.random.split(key, 4)
    p = {}
    for name, k in zip(("q", "k", "v", "o"), ks):
        w, b = _init_linear(k, D, D)
        p["w" + name], p["b" + name] = w, b
    return p


def init_params(key, N, D, H, Dff):
    """Parameters in the PyTorch nn.Linear convention (w: [Dout, Din])."""
    layers = []
    for lk in jax.random.split(key, N):
        k1, k2, k3, k4 = jax.random.split(lk, 4)
        w1, b1 = _init_linear(k3, D, Dff)
        w2, b2 = _init_linear(k4, Dff, D)
        layers.append({
            "self_attn": _init_mha(k1, D),
            "src_attn": _init_mha(k2, D),
            "ffn": {"w1": w1, "b1": b1, "w2": w2, "b2": b2},
            "ln": [{"a": jnp.ones((D,), jnp.float32),
                    "b": jnp.zeros((D,), jnp.float32)} for _ in range(3)],
        })
    return {"layers": layers,
            "norm_a": jnp.ones((D,), jnp.float32),
            "norm_b": jnp.zeros((D,), jnp.float32)}


def _prep_linear(w, b, scale=1.0):
    """PyTorch [Dout, Din] -> kernel layout: W [Din, Dout] bf16, bias [1, Dout] f32."""
    return ((w.T * scale).astype(MATMUL_DTYPE),
            (b * scale).reshape(1, -1).astype(jnp.float32))


def prepare_params(raw, H):
    """One-time prep: transpose, fuse QKV / memory-KV, fold 1/sqrt(dk) into Q."""
    D = raw["norm_a"].shape[0]
    qs = 1.0 / math.sqrt(D // H)
    layers = []
    for lp in raw["layers"]:
        sa, ca, ff = lp["self_attn"], lp["src_attn"], lp["ffn"]
        wq, bq = _prep_linear(sa["wq"], sa["bq"], scale=qs)
        wk, bk = _prep_linear(sa["wk"], sa["bk"])
        wv, bv = _prep_linear(sa["wv"], sa["bv"])
        wo, bo = _prep_linear(sa["wo"], sa["bo"])
        cq_w, cq_b = _prep_linear(ca["wq"], ca["bq"], scale=qs)
        ck_w, ck_b = _prep_linear(ca["wk"], ca["bk"])
        cv_w, cv_b = _prep_linear(ca["wv"], ca["bv"])
        co_w, co_b = _prep_linear(ca["wo"], ca["bo"])
        w1, b1 = _prep_linear(ff["w1"], ff["b1"])
        w2, b2 = _prep_linear(ff["w2"], ff["b2"])
        lns = [(l["a"].reshape(1, -1).astype(jnp.float32),
                l["b"].reshape(1, -1).astype(jnp.float32)) for l in lp["ln"]]
        layers.append({
            "w_qkv": jnp.concatenate([wq, wk, wv], axis=1),   # [D, 3D] bf16
            "b_qkv": jnp.concatenate([bq, bk, bv], axis=1),   # [1, 3D] f32
            "wo_self": wo, "bo_self": bo,
            "w_q": cq_w, "b_q": cq_b,
            "w_kv": jnp.concatenate([ck_w, cv_w], axis=1),    # [D, 2D] bf16
            "b_kv": jnp.concatenate([ck_b, cv_b], axis=1),
            "wo_src": co_w, "bo_src": co_b,
            "w1": w1, "b1": b1, "w2": w2, "b2": b2,
            "ln0_a": lns[0][0], "ln0_b": lns[0][1],
            "ln1_a": lns[1][0], "ln1_b": lns[1][1],
            "ln2_a": lns[2][0], "ln2_b": lns[2][1],
        })
    return {"layers": layers,
            "norm_a": raw["norm_a"].reshape(1, -1).astype(jnp.float32),
            "norm_b": raw["norm_b"].reshape(1, -1).astype(jnp.float32)}


# ---------------------------------- main -------------------------------------

if __name__ == "__main__":
    B, T, S, D, H, Dff, N = 2, 16, 16, 128, 4, 256, 2
    key = jax.random.PRNGKey(0)
    k_par, k_x, k_mem = jax.random.split(key, 3)

    raw_params = init_params(k_par, N, D, H, Dff)
    params = prepare_params(raw_params, H)        # one-time: never transposed per forward

    x = jax.random.normal(k_x, (B, T, D), jnp.float32)
    memory = jax.random.normal(k_mem, (B, S, D), jnp.float32)
    src_mask = jnp.ones((B, 1, S), jnp.float32)                           # all source visible
    tgt_mask = jnp.broadcast_to(jnp.tril(jnp.ones((T, T), jnp.float32)),
                                (B, T, T))                                # causal
    W = list(range(N))                                                    # one entry per layer

    out = decoder_forward(params, x, memory, src_mask, tgt_mask, H, W)
    out = jax.block_until_ready(out)
    assert out.shape == (B, T, D) and out.dtype == jnp.float32
    assert bool(jnp.all(jnp.isfinite(out)))
    print("KERNEL_OK")
</pallas_src>

<mosaic_0001>
module attributes {stable_mosaic.version = 11 : i64} {
  func.func @_ln_qkv_kernel(%arg0: i32, %arg1: memref<32x128xf32, #tpu.memory_space<vmem>>, %arg2: memref<1x128xf32, #tpu.memory_space<vmem>>, %arg3: memref<1x128xf32, #tpu.memory_space<vmem>>, %arg4: memref<128x384xbf16, #tpu.memory_space<vmem>>, %arg5: memref<1x384xf32, #tpu.memory_space<vmem>>, %arg6: memref<32x128xbf16, #tpu.memory_space<vmem>>, %arg7: memref<32x128xbf16, #tpu.memory_space<vmem>>, %arg8: memref<32x128xbf16, #tpu.memory_space<vmem>>) attributes {dimension_semantics = [#tpu.dimension_semantics<parallel>], iteration_bounds = array<i64: 1>, scalar_prefetch = 0 : i64, scratch_operands = 0 : i64, tpu.core_type = #tpu.core_type<tc>, window_params = [{transform_indices = @transform_0, window_bounds = array<i64: 32, 128>}, {pipeline_mode = #tpu.pipeline_mode<synchronous>, transform_indices = @transform_1, window_bounds = array<i64: 1, 128>}, {pipeline_mode = #tpu.pipeline_mode<synchronous>, transform_indices = @transform_2, window_bounds = array<i64: 1, 128>}, {pipeline_mode = #tpu.pipeline_mode<synchronous>, transform_indices = @transform_3, window_bounds = array<i64: 128, 384>}, {pipeline_mode = #tpu.pipeline_mode<synchronous>, transform_indices = @transform_4, window_bounds = array<i64: 1, 384>}, {transform_indices = @transform_5, window_bounds = array<i64: 32, 128>}, {transform_indices = @transform_6, window_bounds = array<i64: 32, 128>}, {transform_indices = @transform_7, window_bounds = array<i64: 32, 128>}]} {
    %c0 = arith.constant 0 : index
    %c0_0 = arith.constant 0 : index
    %0 = vector.load %arg1[%c0, %c0_0] : memref<32x128xf32, #tpu.memory_space<vmem>>, vector<32x128xf32>
    %c0_1 = arith.constant 0 : index
    %c0_2 = arith.constant 0 : index
    %1 = vector.load %arg2[%c0_1, %c0_2] : memref<1x128xf32, #tpu.memory_space<vmem>>, vector<1x128xf32>
    %c0_3 = arith.constant 0 : index
    %c0_4 = arith.constant 0 : index
    %2 = vector.load %arg3[%c0_3, %c0_4] : memref<1x128xf32, #tpu.memory_space<vmem>>, vector<1x128xf32>
    %cst = arith.constant dense<0.000000e+00> : vector<32xf32>
    %3 = vector.multi_reduction <add>, %0, %cst [1] : vector<32x128xf32> to vector<32xf32>
    %4 = vector.shape_cast %3 : vector<32xf32> to vector<32x1xf32>
    %cst_5 = arith.constant 1.280000e+02 : f32
    %5 = vector.broadcast %cst_5 : f32 to vector<32x1xf32>
    %6 = arith.divf %4, %5 : vector<32x1xf32>
    %7 = vector.broadcast %6 : vector<32x1xf32> to vector<32x128xf32>
    %8 = arith.subf %0, %7 : vector<32x128xf32>
    %9 = arith.mulf %8, %8 : vector<32x128xf32>
    %cst_6 = arith.constant dense<0.000000e+00> : vector<32xf32>
    %10 = vector.multi_reduction <add>, %9, %cst_6 [1] : vector<32x128xf32> to vector<32xf32>
    %11 = vector.shape_cast %10 : vector<32xf32> to vector<32x1xf32>
    %cst_7 = arith.constant 1.270000e+02 : f32
    %12 = vector.broadcast %cst_7 : f32 to vector<32x1xf32>
    %13 = arith.divf %11, %12 : vector<32x1xf32>
    %14 = vector.broadcast %1 : vector<1x128xf32> to vector<32x128xf32>
    %15 = arith.mulf %14, %8 : vector<32x128xf32>
    %16 = math.sqrt %13 : vector<32x1xf32>
    %cst_8 = arith.constant 9.99999997E-7 : f32
    %17 = vector.broadcast %cst_8 : f32 to vector<32x1xf32>
    %18 = arith.addf %16, %17 : vector<32x1xf32>
    %19 = vector.broadcast %18 : vector<32x1xf32> to vector<32x128xf32>
    %20 = arith.divf %15, %19 : vector<32x128xf32>
    %21 = vector.broadcast %2 : vector<1x128xf32> to vector<32x128xf32>
    %22 = arith.addf %20, %21 : vector<32x128xf32>
    %23 = arith.truncf %22 : vector<32x128xf32> to vector<32x128xbf16>
    %c0_9 = arith.constant 0 : index
    %c0_10 = arith.constant 0 : index
    %24 = vector.load %arg4[%c0_9, %c0_10] : memref<128x384xbf16, #tpu.memory_space<vmem>>, vector<128x384xbf16>
    %cst_11 = arith.constant dense<0.000000e+00> : vector<32x384xf32>
    %25 = tpu.matmul %23, %24, %cst_11 {dimension_numbers = #tpu.dot_dimension_numbers<[1], [0], [0], [1], [0, 0, 1, 1], [], []>} : vector<32x128xbf16>, vector<128x384xbf16>, vector<32x384xf32> -> vector<32x384xf32>
    %c0_12 = arith.constant 0 : index
    %c0_13 = arith.constant 0 : index
    %26 = vector.load %arg5[%c0_12, %c0_13] : memref<1x384xf32, #tpu.memory_space<vmem>>, vector<1x384xf32>
    %27 = vector.broadcast %26 : vector<1x384xf32> to vector<32x384xf32>
    %28 = arith.addf %25, %27 : vector<32x384xf32>
    %29 = vector.extract_strided_slice %28 {offsets = [0, 0], sizes = [32, 128], strides = [1, 1]} : vector<32x384xf32> to vector<32x128xf32>
    %30 = arith.truncf %29 : vector<32x128xf32> to vector<32x128xbf16>
    %c0_14 = arith.constant 0 : index
    %c0_15 = arith.constant 0 : index
    %31 = vector.load %arg6[%c0_14, %c0_15] : memref<32x128xbf16, #tpu.memory_space<vmem>>, vector<32x128xbf16>
    tpu.vector_store %arg6[%c0_14, %c0_15], %30 {strides = array<i32>} : memref<32x128xbf16, #tpu.memory_space<vmem>>, vector<32x128xbf16>,
    %32 = vector.extract_strided_slice %28 {offsets = [0, 128], sizes = [32, 128], strides = [1, 1]} : vector<32x384xf32> to vector<32x128xf32>
    %33 = arith.truncf %32 : vector<32x128xf32> to vector<32x128xbf16>
    %c0_16 = arith.constant 0 : index
    %c0_17 = arith.constant 0 : index
    %34 = vector.load %arg7[%c0_16, %c0_17] : memref<32x128xbf16, #tpu.memory_space<vmem>>, vector<32x128xbf16>
    tpu.vector_store %arg7[%c0_16, %c0_17], %33 {strides = array<i32>} : memref<32x128xbf16, #tpu.memory_space<vmem>>, vector<32x128xbf16>,
    %35 = vector.extract_strided_slice %28 {offsets = [0, 256], sizes = [32, 128], strides = [1, 1]} : vector<32x384xf32> to vector<32x128xf32>
    %36 = arith.truncf %35 : vector<32x128xf32> to vector<32x128xbf16>
    %c0_18 = arith.constant 0 : index
    %c0_19 = arith.constant 0 : index
    %37 = vector.load %arg8[%c0_18, %c0_19] : memref<32x128xbf16, #tpu.memory_space<vmem>>, vector<32x128xbf16>
    tpu.vector_store %arg8[%c0_18, %c0_19], %36 {strides = array<i32>} : memref<32x128xbf16, #tpu.memory_space<vmem>>, vector<32x128xbf16>,
    return
  }
  func.func @transform_0(%arg0: i32) -> (i32, i32) {
    %c0_i32 = arith.constant 0 : i32
    %c0_i32_0 = arith.constant 0 : i32
    return %arg0, %c0_i32 : i32, i32
  }
  func.func @transform_1(%arg0: i32) -> (i32, i32) {
    %c0_i32 = arith.constant 0 : i32
    %c0_i32_0 = arith.constant 0 : i32
    %c0_i32_1 = arith.constant 0 : i32
    return %c0_i32, %c0_i32_0 : i32, i32
  }
  func.func @transform_2(%arg0: i32) -> (i32, i32) {
    %c0_i32 = arith.constant 0 : i32
    %c0_i32_0 = arith.constant 0 : i32
    %c0_i32_1 = arith.constant 0 : i32
    return %c0_i32, %c0_i32_0 : i32, i32
  }
  func.func @transform_3(%arg0: i32) -> (i32, i32) {
    %c0_i32 = arith.constant 0 : i32
    %c0_i32_0 = arith.constant 0 : i32
    %c0_i32_1 = arith.constant 0 : i32
    return %c0_i32, %c0_i32_0 : i32, i32
  }
  func.func @transform_4(%arg0: i32) -> (i32, i32) {
    %c0_i32 = arith.constant 0 : i32
    %c0_i32_0 = arith.constant 0 : i32
    %c0_i32_1 = arith.constant 0 : i32
    return %c0_i32, %c0_i32_0 : i32, i32
  }
  func.func @transform_5(%arg0: i32) -> (i32, i32) {
    %c0_i32 = arith.constant 0 : i32
    %c0_i32_0 = arith.constant 0 : i32
    return %arg0, %c0_i32 : i32, i32
  }
  func.func @transform_6(%arg0: i32) -> (i32, i32) {
    %c0_i32 = arith.constant 0 : i32
    %c0_i32_0 = arith.constant 0 : i32
    return %arg0, %c0_i32 : i32, i32
  }
  func.func @transform_7(%arg0: i32) -> (i32, i32) {
    %c0_i32 = arith.constant 0 : i32
    %c0_i32_0 = arith.constant 0 : i32
    return %arg0, %c0_i32 : i32, i32
  }
}

</mosaic_0001>

<bundles_post_ra>
// kernel: tpu_custom_call.1
= control target key start
LH: loop header
LB: loop body
LE: loop exit
PB: predicated region body
PF: predicated region fallthrough
CT: control target
= control target key end

     0   :  { %13 = vsyncpa [#allocation3], 0  ;;  %s1001_s0 = inlined_call_operand.hbm [shape: f32[32,128], index: 0, kind: input, shape index: {}]   ;;  %s1002_s1 = inlined_call_operand.vmem [shape: f32[1,128], index: 1, kind: input, shape index: {}]   ;;  %s1003_s2 = inlined_call_operand.vmem [shape: f32[1,128], index: 2, kind: input, shape index: {}]   ;;  %s1004_s3 = inlined_call_operand.hbm [shape: bf16[128,384], index: 3, kind: input, shape index: {}]   ;;  %s1005_s4 = inlined_call_operand.vmem [shape: f32[1,384], index: 4, kind: input, shape index: {}]   ;;  %s1006_s5 = inlined_call_operand.hbm [shape: bf16[32,128], index: 5, kind: output, shape index: {0}]   ;;  %s1007_s6 = inlined_call_operand.hbm [shape: bf16[32,128], index: 6, kind: output, shape index: {1}]   ;;  %s1008_s7 = inlined_call_operand.hbm [shape: bf16[32,128], index: 7, kind: output, shape index: {2}]  }
   0x1   :  { %14 = vsyncpa [#allocation6], 0 }
   0x2   :  { %15 = vsyncpa [#allocation4], 0 }
   0x3   :  { %16 = vsyncpa [#allocation9], 0  ;;  %s835_s24 = smov [#allocation2]   ;;  %s717_s28 = scalar_lea.hbm %s1001_s0, 512 }
   0x4   :  { %s22_s25 = sshll.u32 %s835_s24, 4  ;;  %p718_p0 = scmp.ne.s32.totalorder %s1001_s0, %s717_s28  ;;  %s23_s25 = int_to_ptr.vmem [resolvable:$true] %s22_s25 }
   0x5   :  { %p721_p1 = scmp.lt.u32.totalorder %s717_s28, %s1001_s0 }
   0x7   :  { %p723_p2 = pnand %p721_p1, %p718_p0 }
   0x9   :  { %726 = shalt.err (!%p723_p2)
}
   0xa   :  { %s727_s10 = scalar_lea.vmem %s23_s25, 512  ;;  %p732_p4 = scmp.lt.s32.totalorder %s23_s25, %s23_s25 }
   0xb   :  { %p728_p3 = scmp.ne.s32.totalorder %s23_s25, %s727_s10  ;;  %p733_p5 = scmp.lt.s32.totalorder %s727_s10, %s727_s10 }
   0xd   :  { %p734_p6 = por %p733_p5, %p732_p4 }
   0xf   :  { %p735_p7 = pnand %p734_p6, %p728_p3 }
  0x11   :  { %738 = shalt.err (!%p735_p7)
}
  0x12   :  { %s836_s11 = smov 128   ;;  %s837_s12 = smov 8  }
  0x13   :  { %28 = dma.hbm_to_vmem [thread:$0]  %s1001_s0, 512, %s23_s25, [#allocation3], %s836_s11, %s836_s11, %s837_s12  }
  0x14   :  { %s838_s15 = smov [#allocation5]   ;;  %s739_s19 = scalar_lea.hbm %s1004_s3, 3072 }
  0x15   :  { %s38_s16 = sshll.u32 %s838_s15, 4  ;;  %p740_p8 = scmp.ne.s32.totalorder %s1004_s3, %s739_s19  ;;  %s39_s16 = int_to_ptr.vmem [resolvable:$true] %s38_s16 }
  0x16   :  { %p743_p9 = scmp.lt.u32.totalorder %s739_s19, %s1004_s3 }
  0x18   :  { %p745_p10 = pnand %p743_p9, %p740_p8 }
  0x1a   :  { %748 = shalt.err (!%p745_p10)
}
  0x1b   :  { %s749_s24 = scalar_lea.vmem %s39_s16, 3072  ;;  %p754_p12 = scmp.lt.s32.totalorder %s39_s16, %s39_s16 }
  0x1c   :  { %p750_p11 = scmp.ne.s32.totalorder %s39_s16, %s749_s24  ;;  %p755_p13 = scmp.lt.s32.totalorder %s749_s24, %s749_s24 }
  0x1e   :  { %p756_p0 = por %p755_p13, %p754_p12 }
  0x20   :  { %p757_p1 = pnand %p756_p0, %p750_p11 }
  0x22   :  { %760 = shalt.err (!%p757_p1)
}
  0x23   :  { %s839_s0 = smov 192   ;;  %s840_s25 = smov 12  }
  0x24   :  { %44 = dma.hbm_to_vmem [thread:$0]  %s1004_s3, 3072, %s39_s16, [#allocation6], %s839_s0, %s839_s0, %s840_s25  }
  0x25   :  { %827 = dma.done.wait [#allocation3], 512  }
  0x26   :  { %828 = vsyncadd [#allocation3], 4294966784 }
  0x27   :  { %829 = dma.done.wait [#allocation6], 3072  }
  0x28   :  { %830 = vsyncadd [#allocation6], 4294964224  ;;  %v54_v0 = vld [vmem:[#allocation2] sm:$0xff]  ;;  %v56_v1 = vld [vmem:[#allocation2 + $0x10] sm:$0xff]  ;;  %v841_v39 = vmov 0   ;;  %s843_s9 = smov [#allocation8]  }
  0x29   :  { %60 = vadd.xlane.f32.xlu0 %v54_v0  ;;  %64 = vadd.xlane.f32.xlu1 %v56_v1  ;;  %v55_v2 = vld [vmem:[#allocation2 + $0x8] sm:$0xff]  ;;  %v57_v3 = vld [vmem:[#allocation2 + $0x18] sm:$0xff]  ;;  %v669_v20 = vld [vmem:[#allocation5 + $0x4] ss:$12 sps:$4 sm:$0xff]   ;;  %s512_s10 = sshll.u32 %s843_s9, 4  ;;  %s844_s11 = smov [#allocation10]   ;;  %s942_s10 = int_to_ptr.vmem [resolvable:$true] %s512_s10 }
  0x2a   :  { %v671_v21 = vld [vmem:[#allocation5] ss:$12 sps:$4 sm:$0xff]   ;;  %333 = vmatprep.subr.bf16.mxu0 %v669_v20  ;;  %v672_v22 = vld [vmem:[#allocation5 + $0x1c] ss:$12 sps:$4 sm:$0xff]   ;;  %v675_v24 = vld [vmem:[#allocation5 + $0x18] ss:$12 sps:$4 sm:$0xff]   ;;  %365 = vmatprep.mubr.bf16.mxu0 %v841_v39 }
  0x2b   :  { %334 = vmatpush1.bf16.msra.mxu0 %v671_v21  ;;  %v674_v23 = vld [vmem:[#allocation5 + $0x8] ss:$12 sps:$4 sm:$0xff]   ;;  %v678_v26 = vld [vmem:[#allocation5 + $0x20] ss:$12 sps:$4 sm:$0xff]   ;;  %v679_v27 = vld [vmem:[#allocation5 + $0x30] ss:$12 sps:$4 sm:$0xff]  }
  0x2c   :  { %335 = vmatprep.subr.bf16.mxu0 %v672_v22  ;;  %637 = vmatprep.subr.bf16.mxu1 %v674_v23  ;;  %v676_v25 = vld [vmem:[#allocation5 + $0x34] ss:$12 sps:$4 sm:$0xff]   ;;  %v680_v28 = vld [vmem:[#allocation5 + $0x4c] ss:$12 sps:$4 sm:$0xff]   ;;  %v684_v31 = vld [vmem:[#allocation5 + $0x64] ss:$12 sps:$4 sm:$0xff]  }
  0x2d   :  { %62 = vadd.xlane.f32.xlu0 %v55_v2  ;;  %66 = vadd.xlane.f32.xlu1 %v57_v3  ;;  %v682_v29 = vld [vmem:[#allocation5 + $0x38] ss:$12 sps:$4 sm:$0xff]   ;;  %v683_v30 = vld [vmem:[#allocation5 + $0x48] ss:$12 sps:$4 sm:$0xff]   ;;  %v686_v32 = vld [vmem:[#allocation5 + $0x50] ss:$12 sps:$4 sm:$0xff]  }
  0x2e   :  { %638 = vmatpush3.bf16.msra.mxu1 %v674_v23  ;;  %v687_v33 = vld [vmem:[#allocation5 + $0x60] ss:$12 sps:$4 sm:$0xff]   ;;  %v688_v34 = vld [vmem:[#allocation5 + $0x7c] ss:$12 sps:$4 sm:$0xff]   ;;  %v691_v36 = vld [vmem:[#allocation5 + $0x78] ss:$12 sps:$4 sm:$0xff]  }
  0x2f   :  { %336 = vmatpush1.bf16.msra.mxu0 %v675_v24  ;;  %639 = vmatprep.subr.bf16.mxu1 %v678_v26  ;;  %v690_v35 = vld [vmem:[#allocation5 + $0x68] ss:$12 sps:$4 sm:$0xff]   ;;  %v694_v38 = vld [vmem:[#allocation5 + $0x80] ss:$12 sps:$4 sm:$0xff]   ;;  %v695_v40 = vld [vmem:[#allocation5 + $0x90] ss:$12 sps:$4 sm:$0xff]  }
  0x30   :  { %337 = vmatprep.subr.bf16.mxu0 %v676_v25  ;;  %v692_v37 = vld [vmem:[#allocation5 + $0x94] ss:$12 sps:$4 sm:$0xff]   ;;  %v696_v41 = vld [vmem:[#allocation5 + $0xac] ss:$12 sps:$4 sm:$0xff]   ;;  %v700_v44 = vld [vmem:[#allocation5 + $0xb0] ss:$12 sps:$4 sm:$0xff]  }
  0x31   :  { %v698_v42 = vld [vmem:[#allocation5 + $0x98] ss:$12 sps:$4 sm:$0xff]   ;;  %v699_v43 = vld [vmem:[#allocation5 + $0xa8] ss:$12 sps:$4 sm:$0xff]   ;;  %v545_v23 = vld [vmem:[%s1003_s2] ss:$0 sm:$0xff] }
  0x32   :  { %640 = vmatpush3.bf16.msra.mxu1 %v678_v26  ;;  %s524_s12 = sshll.u32 %s844_s11, 4  ;;  %s944_s12 = int_to_ptr.vmem [resolvable:$true] %s524_s12 }
  0x33   :  { %338 = vmatpush1.bf16.msra.mxu0 %v679_v27  ;;  %641 = vmatprep.subr.bf16.mxu1 %v682_v29 }
  0x34   :  { %339 = vmatprep.subr.bf16.mxu0 %v680_v28 }
  0x36   :  { %642 = vmatpush3.bf16.msra.mxu1 %v682_v29 }
  0x37   :  { %340 = vmatpush1.bf16.msra.mxu0 %v683_v30  ;;  %643 = vmatprep.subr.bf16.mxu1 %v686_v32 }
  0x38   :  { %341 = vmatprep.subr.bf16.mxu0 %v684_v31 }
  0x3a   :  { %644 = vmatpush3.bf16.msra.mxu1 %v686_v32 }
  0x3b   :  { %342 = vmatpush1.bf16.msra.mxu0 %v687_v33  ;;  %645 = vmatprep.subr.bf16.mxu1 %v690_v35 }
  0x3c   :  { %343 = vmatprep.subr.bf16.mxu0 %v688_v34 }
  0x3e   :  { %646 = vmatpush3.bf16.msra.mxu1 %v690_v35  ;;  %v190_v35 = vlaneseq }
  0x3f   :  { %344 = vmatpush1.bf16.msra.mxu0 %v691_v36  ;;  %647 = vmatprep.subr.bf16.mxu1 %v694_v38 }
  0x40   :  { %345 = vmatprep.subr.bf16.mxu0 %v692_v37 }
  0x42   :  { %648 = vmatpush3.bf16.msra.mxu1 %v694_v38 }
  0x43   :  { %346 = vmatpush1.bf16.msra.mxu0 %v695_v40  ;;  %649 = vmatprep.subr.bf16.mxu1 %v698_v42 }
  0x44   :  { %347 = vmatprep.subr.bf16.mxu0 %v696_v41 }
  0x46   :  { %650 = vmatpush3.bf16.msra.mxu1 %v698_v42 }
  0x47   :  { %348 = vmatpush1.bf16.msra.mxu0 %v699_v43  ;;  %651 = vmatprep.subr.bf16.mxu1 %v700_v44 }
  0x4a   :  { %652 = vmatpush3.bf16.msra.mxu1 %v700_v44 }
  0xb6   :  { %v61_v4 = vpop.xlane.xlu0 %60  ;;  %v65_v5 = vpop.xlane.xlu1 %64 }
  0xb7   :  { %v69_v6 = vmul.f32 0.0078125, %v61_v4  ;;  %v71_v7 = vmul.f32 0.0078125, %v65_v5 }
  0xb9   :  { %v911_v8 = vsub.f32 %v54_v0, %v69_v6  ;;  %v913_v9 = vsub.f32 %v56_v1, %v71_v7 }
  0xba   :  { %v63_v10 = vpop.xlane.xlu0 %62  ;;  %v67_v11 = vpop.xlane.xlu1 %66 }
  0xbb   :  { %v70_v12 = vmul.f32 0.0078125, %v63_v10  ;;  %v77_v13 = vmul.f32 %v911_v8, %v911_v8  ;;  %v72_v14 = vmul.f32 0.0078125, %v67_v11  ;;  %v79_v16 = vmul.f32 %v913_v9, %v913_v9 }
  0xbd   :  { %v917_v15 = vsub.f32 %v55_v2, %v70_v12  ;;  %81 = vadd.xlane.f32.xlu0 %v77_v13  ;;  %v921_v17 = vsub.f32 %v57_v3, %v72_v14 }
  0xbf   :  { %v78_v18 = vmul.f32 %v917_v15, %v917_v15  ;;  %v80_v19 = vmul.f32 %v921_v17, %v921_v17 }
  0xc1   :  { %85 = vadd.xlane.f32.xlu0 %v79_v16  ;;  %83 = vadd.xlane.f32.xlu1 %v78_v18  ;;  %v544_v16 = vld [vmem:[%s1002_s1] ss:$0 sm:$0xff] }
  0xc2   :  { %v101_v20 = vmul.f32 %v544_v16, %v917_v15  ;;  %v102_v25 = vmul.f32 %v544_v16, %v913_v9  ;;  %v103_v27 = vmul.f32 %v544_v16, %v921_v17  ;;  %v191_v9 = vshrl.u32 %v190_v35, 7  ;;  %v188_v17 = vld [vmem:[%s1005_s4] sm:$0x7]  ;;  %s842_s4 = smov [#allocation7]  }
  0xc3   :  { %s500_s8 = sshll.u32 %s842_s4, 4  ;;  %s501_s8 = int_to_ptr.vmem [resolvable:$true] %s500_s8 }
  0xc4   :  { %v192_v36 = vsub.s32 0, %v191_v9  ;;  %v196_v37 = vsub.s32 1, %v191_v9  ;;  %v200_v40 = vsub.s32 2, %v191_v9  ;;  %s761_s13 = scalar_lea.vmem %s501_s8, 256  ;;  %p766_p3 = scmp.lt.s32.totalorder %s501_s8, %s501_s8 }
  0xc5   :  { %87 = vadd.xlane.f32.xlu1 %v80_v19  ;;  %v100_v19 = vmul.f32 %v544_v16, %v911_v8  ;;  %p762_p2 = scmp.ne.s32.totalorder %s501_s8, %s761_s13  ;;  %p767_p4 = scmp.lt.s32.totalorder %s761_s13, %s761_s13 }
  0xc6   :  { %v193_v38 = vrot.slane %v188_v17, %v192_v36  ;;  %v197_v42 = vrot.slane %v188_v17, %v196_v37 }
  0xc7   :  { %p768_p5 = por %p767_p4, %p766_p3 }
  0xc9   :  { %p769_p6 = pnand %p768_p5, %p762_p2 }
 0x14a   :  { %v82_v45 = vpop.xlane.xlu0 %81 }
 0x14b   :  { %v90_v46 = vmul.f32 0.007874016, %v82_v45 }
 0x14d   :  { %701 = vrsqrt.f32 %v90_v46  ;;  %vm106_vm0 = vcmp.eq.f32.partialorder %v90_v46, inf  ;;  %v109_v55 = vand.u32 2147483648, %v90_v46  ;;  %vm108_vm1 = vcmp.eq.f32.partialorder %v90_v46, 0.0 }
 0x14e   :  { %v84_v47 = vpop.xlane.xlu1 %83  ;;  %v86_v48 = vpop.xlane.xlu0 %85 }
 0x14f   :  { %v91_v49 = vmul.f32 0.007874016, %v84_v47  ;;  %v92_v50 = vmul.f32 0.007874016, %v86_v48  ;;  %v201_v47 = vrot.slane %v188_v17, %v200_v40 }
 0x151   :  { %703 = vrsqrt.f32 %v91_v49  ;;  %vm113_vm2 = vcmp.eq.f32.partialorder %v91_v49, inf  ;;  %vm115_vm3 = vcmp.eq.f32.partialorder %v91_v49, 0.0  ;;  %v116_v62 = vand.u32 2147483648, %v91_v49 }
 0x152   :  { %705 = vrsqrt.f32 %v92_v50  ;;  %v88_v51 = vpop.xlane.xlu1 %87  ;;  %vm120_vm4 = vcmp.eq.f32.partialorder %v92_v50, inf  ;;  %v123_v1 = vand.u32 2147483648, %v92_v50  ;;  %vm122_vm5 = vcmp.eq.f32.partialorder %v92_v50, 0.0 }
 0x153   :  { %v93_v52 = vmul.f32 0.007874016, %v88_v51 }
 0x155   :  { %707 = vrsqrt.f32 %v93_v52  ;;  %vm127_vm6 = vcmp.eq.f32.partialorder %v93_v52, inf  ;;  %v130_v10 = vand.u32 2147483648, %v93_v52  ;;  %vm129_vm7 = vcmp.eq.f32.partialorder %v93_v52, 0.0 }
 0x157   :  { %v702_v53 = vpop.eup %701 }
 0x158   :  { %v105_v54 = vmul.f32 %v702_v53, %v90_v46 }
 0x15a   :  { %v107_v56 = vsel %vm106_vm0, %v90_v46, %v105_v54 }
 0x15b   :  { %v704_v57 = vpop.eup %703  ;;  %v110_v58 = vsel %vm108_vm1, %v109_v55, %v107_v56 }
 0x15c   :  { %v706_v59 = vpop.eup %705  ;;  %v112_v60 = vmul.f32 %v704_v57, %v91_v49  ;;  %v132_v61 = vadd.f32 1e-06, %v110_v58 }
 0x15d   :  { %v119_v63 = vmul.f32 %v706_v59, %v92_v50 }
 0x15e   :  { %v114_v0 = vsel %vm113_vm2, %v91_v49, %v112_v60  ;;  %709 = vrcp.f32 %v132_v61 }
 0x15f   :  { %v708_v2 = vpop.eup %707  ;;  %v121_v3 = vsel %vm120_vm4, %v92_v50, %v119_v63  ;;  %v117_v4 = vsel %vm115_vm3, %v116_v62, %v114_v0 }
 0x160   :  { %v126_v5 = vmul.f32 %v708_v2, %v93_v52  ;;  %v133_v6 = vadd.f32 1e-06, %v117_v4  ;;  %v124_v7 = vsel %vm122_vm5, %v123_v1, %v121_v3 }
 0x161   :  { %v134_v11 = vadd.f32 1e-06, %v124_v7 }
 0x162   :  { %v128_v12 = vsel %vm127_vm6, %v93_v52, %v126_v5  ;;  %711 = vrcp.f32 %v133_v6 }
 0x163   :  { %v131_v13 = vsel %vm129_vm7, %v130_v10, %v128_v12  ;;  %713 = vrcp.f32 %v134_v11 }
 0x164   :  { %v135_v14 = vadd.f32 1e-06, %v131_v13 }
 0x166   :  { %715 = vrcp.f32 %v135_v14 }
 0x168   :  { %v710_v18 = vpop.eup %709 }
 0x169   :  { %v137_v21 = vmul.f32 %v710_v18, %v100_v19 }
 0x16b   :  { %v150_v28 = vadd.f32 %v545_v23, %v137_v21 }
 0x16c   :  { %v712_v22 = vpop.eup %711 }
 0x16d   :  { %v714_v24 = vpop.eup %713  ;;  %v139_v26 = vmul.f32 %v712_v22, %v101_v20 }
 0x16e   :  { %v141_v30 = vmul.f32 %v714_v24, %v102_v25 }
 0x16f   :  { %v151_v29 = vadd.f32 %v545_v23, %v139_v26 }
 0x170   :  { %v716_v31 = vpop.eup %715  ;;  %v152_v15 = vadd.f32 %v545_v23, %v141_v30 }
 0x171   :  { %v154_v32 = vpack.c.bf16 %v151_v29, %v150_v28  ;;  %v143_v8 = vmul.f32 %v716_v31, %v103_v27 }
 0x173   :  { %366 = vmatmul.mubr.bf16.vlgmr.msra.gmra.mrb[0].mxu0 %v154_v32  ;;  %653 = vmatprep.mubr.bf16.mxu1 %v154_v32  ;;  %v153_v33 = vadd.f32 %v545_v23, %v143_v8 }
 0x174   :  { %375 = vmatprep.mubr.bf16.mxu0 %v841_v39 }
 0x175   :  { %v155_v34 = vpack.c.bf16 %v153_v33, %v152_v15 }
 0x177   :  { %654 = vmatmul.mubr.bf16.vlgmr.msra.gmra.mrb[0].mxu1 %v155_v34 }
 0x17b   :  { %376 = vmatmul.mubr.bf16.gmra.mrb[4].mxu0 %v155_v34 }
 0x246   :  { %v367_v41 = vpop.f32.mrb[0].mxu0 }
 0x247   :  { %v369_v43 = vpop.f32.mrb[1].mxu0  ;;  %v368_v45 = vadd.f32 %v367_v41, %v193_v38 }
 0x248   :  { %v371_v44 = vpop.f32.mrb[2].mxu0  ;;  %v370_v48 = vadd.f32 %v369_v43, %v197_v42 }
 0x249   :  { %v372_v46 = vadd.f32 %v371_v44, %v193_v38  ;;  %v373_v39 = vpop.f32.mrb[3].mxu0 }
 0x24a   :  { %v374_v49 = vadd.f32 %v373_v39, %v197_v42  ;;  %v655_v50 = vpop.f32.mrb[0].mxu1 }
 0x24b   :  { %v597_v51 = vpack.c.bf16 %v372_v46, %v368_v45  ;;  %v420_v52 = vpop.f32.mrb[1].mxu1  ;;  %v429_v55 = vadd.f32 %v655_v50, %v201_v47 }
 0x24c   :  { %v607_v53 = vpack.c.bf16 %v374_v49, %v370_v48  ;;  %v656_v54 = vpop.f32.mrb[2].mxu1  ;;  %v421_v58 = vadd.f32 %v420_v52, %v201_v47 }
 0x24d   :  { %598 = vst [vmem:[#allocation7] sm:$0xff] %v597_v51   ;;  %v432_v56 = vadd.f32 %v656_v54, %v201_v47  ;;  %v423_v57 = vpop.f32.mrb[3].mxu1 }
 0x24e   :  { %608 = vst [vmem:[#allocation8] sm:$0xff] %v607_v53   ;;  %v424_v59 = vadd.f32 %v423_v57, %v201_v47  ;;  %v377_v60 = vpop.f32.mrb[4].mxu0 }
 0x24f   :  { %v622_v61 = vpack.c.bf16 %v432_v56, %v429_v55  ;;  %v379_v62 = vpop.f32.mrb[5].mxu0  ;;  %v378_v1 = vadd.f32 %v377_v60, %v193_v38 }
 0x250   :  { %v617_v63 = vpack.c.bf16 %v424_v59, %v421_v58  ;;  %v381_v0 = vpop.f32.mrb[6].mxu0  ;;  %v380_v4 = vadd.f32 %v379_v62, %v197_v42 }
 0x251   :  { %626 = vst [vmem:[#allocation10 + $0x8] sm:$0xff] %v622_v61   ;;  %v382_v2 = vadd.f32 %v381_v0, %v193_v38  ;;  %v383_v3 = vpop.f32.mrb[7].mxu0 }
 0x252   :  { %618 = vst [vmem:[#allocation10] sm:$0xff] %v617_v63   ;;  %v384_v5 = vadd.f32 %v383_v3, %v197_v42 }
 0x253   :  { %v602_v6 = vpack.c.bf16 %v382_v2, %v378_v1 }
 0x254   :  { %v612_v7 = vpack.c.bf16 %v384_v5, %v380_v4 }
 0x255   :  { %624 = vst [vmem:[#allocation7 + $0x8] sm:$0xff] %v602_v6  }
 0x256   :  { %625 = vst [vmem:[#allocation8 + $0x8] sm:$0xff] %v612_v7  }
 0x257   :  { %772 = shalt.err (!%p769_p6)
}
 0x258   :  { %s773_s16 = scalar_lea.hbm %s1006_s5, 256 }
 0x259   :  { %p774_p7 = scmp.ne.s32.totalorder %s1006_s5, %s773_s16  ;;  %p777_p8 = scmp.lt.u32.totalorder %s773_s16, %s1006_s5 }
 0x25b   :  { %p779_p9 = pnand %p777_p8, %p774_p7 }
 0x25d   :  { %782 = shalt.err (!%p779_p9)
}
 0x25e   :  { %s845_s21 = smov 64   ;;  %s846_s22 = smov 4  }
 0x25f   :  { %506 = dma.vmem_to_hbm [thread:$0]  %s501_s8, 256, %s1006_s5, [#allocation4], %s845_s21, %s845_s21, %s846_s22  }
 0x260   :  { %s783_s0 = scalar_lea.vmem %s942_s10, 256  ;;  %p788_p11 = scmp.lt.s32.totalorder %s942_s10, %s942_s10 }
 0x261   :  { %p784_p10 = scmp.ne.s32.totalorder %s942_s10, %s783_s0  ;;  %p789_p12 = scmp.lt.s32.totalorder %s783_s0, %s783_s0 }
 0x263   :  { %p790_p13 = por %p789_p12, %p788_p11 }
 0x265   :  { %p791_p0 = pnand %p790_p13, %p784_p10 }
 0x267   :  { %794 = shalt.err (!%p791_p0)
}
 0x268   :  { %s795_s27 = scalar_lea.hbm %s1007_s6, 256 }
 0x269   :  { %p796_p1 = scmp.ne.s32.totalorder %s1007_s6, %s795_s27  ;;  %p799_p2 = scmp.lt.u32.totalorder %s795_s27, %s1007_s6 }
 0x26b   :  { %p801_p3 = pnand %p799_p2, %p796_p1 }
 0x26d   :  { %804 = shalt.err (!%p801_p3)
}
 0x26e   :  { %518 = dma.vmem_to_hbm [thread:$0]  %s942_s10, 256, %s1007_s6, [#allocation9], %s845_s21, %s845_s21, %s846_s22  }
 0x26f   :  { %s805_s2 = scalar_lea.vmem %s944_s12, 256  ;;  %p810_p5 = scmp.lt.s32.totalorder %s944_s12, %s944_s12 }
 0x270   :  { %p806_p4 = scmp.ne.s32.totalorder %s944_s12, %s805_s2  ;;  %p811_p6 = scmp.lt.s32.totalorder %s805_s2, %s805_s2 }
 0x272   :  { %p812_p7 = por %p811_p6, %p810_p5 }
 0x274   :  { %p813_p8 = pnand %p812_p7, %p806_p4 }
 0x276   :  { %816 = shalt.err (!%p813_p8)
}
 0x277   :  { %s817_s9 = scalar_lea.hbm %s1008_s7, 256 }
 0x278   :  { %p818_p9 = scmp.ne.s32.totalorder %s1008_s7, %s817_s9  ;;  %p821_p10 = scmp.lt.u32.totalorder %s817_s9, %s1008_s7 }
 0x27a   :  { %p823_p11 = pnand %p821_p10, %p818_p9 }
 0x27c   :  { %826 = shalt.err (!%p823_p11)
}
 0x27d   :  { %530 = dma.vmem_to_hbm [thread:$0]  %s944_s12, 256, %s1008_s7, [#allocation9], %s845_s21, %s845_s21, %s846_s22  }
 0x27e   :  { %831 = dma.done.wait [#allocation4], 256  }
 0x27f   :  { %832 = vsyncadd [#allocation4], 4294967040 }
 0x280   :  { %833 = dma.done.wait [#allocation9], 512  }
 0x281   :  { %834 = vsyncadd [#allocation9], 4294966784 }
 0x282   :  { %540 = vsyncpa [#allocation3], 1 }
 0x283   :  { %541 = vsyncpa [#allocation6], 1 }
 0x284   :  { %542 = vsyncpa [#allocation4], 1 }
 0x285   :  { %543 = vsyncpa [#allocation9], 1 }

</bundles_post_ra>
